<compile_context>
chip_gen: v7x
topology: tpu7x:2x2x1
jax: 0.10.0
libtpu: 0.0.40
codegen_flags: <defaults>
</compile_context>

<pallas_src>
import numpy as np

import jax
import jax.numpy as jnp
from jax.experimental import pallas as pl
from jax.experimental.pallas import tpu as pltpu


def _round_up(v, m):
    return (v + m - 1) // m * m


def _conv_swish_kernel(w_ref, b_ref, x_ref, o_ref):
    """Fused GEMM + bias + h_swish epilogue.

    w_ref: (Cout, K)   conv weight with BN scale pre-folded
    b_ref: (Cout, 1)   folded BN bias = beta - mean * scale
    x_ref: (K, tm)     im2col columns for this tile
    o_ref: (Cout, tm)  output tile (lane-dense)
    """
    acc = jnp.dot(w_ref[...], x_ref[...], preferred_element_type=jnp.float32)
    y = acc + b_ref[...]
    # h_swish(y) = y * relu6(y + 3) / 6
    o_ref[...] = (y * jnp.clip(y + 3.0, 0.0, 6.0) * (1.0 / 6.0)).astype(o_ref.dtype)


def conv_swish(x, w, gamma, beta, mean, var, *, stride=2, padding=1, eps=1e-5):
    """ConvSwish forward.  x: (N, Cin, H, W) NCHW, w: (Cout, Cin, KH, KW)."""
    N, Cin, H, W = x.shape
    Cout, Cin_w, KH, KW = w.shape
    assert Cin_w == Cin, "groups != 1 not supported"

    OH = (H + 2 * padding - KH) // stride + 1
    OW = (W + 2 * padding - KW) // stride + 1
    K = Cin * KH * KW
    M = N * OH * OW

    # ---- im2col (wrapper-side layout plumbing) ---------------------------
    xp = jnp.pad(x, ((0, 0), (0, 0), (padding, padding), (padding, padding)))
    rows = []
    for kh in range(KH):
        for kw in range(KW):
            rows.append(
                xp[:, :,
                   kh:kh + stride * (OH - 1) + 1:stride,
                   kw:kw + stride * (OW - 1) + 1:stride])      # (N, Cin, OH, OW)
    patches = jnp.stack(rows, axis=0).reshape(KH, KW, N, Cin, OH, OW)
    # K ordered as (Cin, KH, KW) to match w.reshape(Cout, Cin*KH*KW)
    patches = patches.transpose(3, 0, 1, 2, 4, 5)              # (Cin,KH,KW,N,OH,OW)
    cols = patches.reshape(K, M)

    # ---- tile-size selection (tile first, then pad M up to it) -----------
    # Target ~2 MiB of per-step HBM traffic; clamp to [128, 8192].
    bytes_per_col = (K + 2 * Cout) * 4
    tm = ((2 << 20) // max(bytes_per_col, 1)) // 128 * 128
    tm = max(128, min(8192, tm))
    # Keep >=2 tiles when the problem allows it (feeds both v7x TensorCores);
    # never pad a tiny problem up to a huge tile.
    half_m = max(128, _round_up(pl.cdiv(M, 2), 128))
    tm = min(tm, half_m)

    Mp = _round_up(M, tm)
    if Mp != M:
        cols = jnp.pad(cols, ((0, 0), (0, Mp - M)))
    grid_m = Mp // tm

    # ---- fold BatchNorm (inference) into weight / bias --------------------
    scale = gamma / jnp.sqrt(var + eps)                                    # (Cout,)
    bias = (beta - mean * scale).astype(jnp.float32).reshape(Cout, 1)
    w_mat = (w.reshape(Cout, K).astype(jnp.float32) * scale[:, None]).astype(x.dtype)

    # ---- VMEM budget (padded-layout estimate, explicit limit) -------------
    Cp = _round_up(Cout, 8)
    vmem_est = 4 * (2 * _round_up(K, 8) * tm       # x tile, double-buffered
                    + 2 * Cp * tm                  # out tile, double-buffered
                    + Cp * _round_up(K, 128)       # resident weight (Buffered(1))
                    + Cp * 128                     # resident bias  (Buffered(1))
                    + Cp * tm)                     # f32 intermediate
    vmem_limit = int(min(max(2 * vmem_est, 32 << 20), 48 << 20))

    out_mat = pl.pallas_call(
        _conv_swish_kernel,
        out_shape=jax.ShapeDtypeStruct((Cout, Mp), x.dtype),
        grid_spec=pltpu.PrefetchScalarGridSpec(
            num_scalar_prefetch=0,
            grid=(grid_m,),
            in_specs=[
                # Resident across the whole grid -> single-buffered.
                pl.BlockSpec((Cout, K), lambda i: (0, 0),
                             pipeline_mode=pl.Buffered(1)),
                pl.BlockSpec((Cout, 1), lambda i: (0, 0),
                             pipeline_mode=pl.Buffered(1)),
                # Streaming im2col columns tile.
                pl.BlockSpec((K, tm), lambda i: (0, i)),
            ],
            out_specs=pl.BlockSpec((Cout, tm), lambda i: (0, i)),
        ),
        compiler_params=pltpu.CompilerParams(
            dimension_semantics=("parallel",),
            vmem_limit_bytes=vmem_limit,
        ),
    )(w_mat, bias, cols)

    # (Cout, Mp) -> drop pad columns -> (N, Cout, OH, OW)
    out = out_mat[:, :M].reshape(Cout, N, OH, OW).transpose(1, 0, 2, 3)
    return out


if __name__ == "__main__":
    key = jax.random.PRNGKey(0)
    kx, kw = jax.random.split(key, 2)

    # Small shapes consistent with the module defaults.
    N, Cin, H, W = 2, 4, 16, 16
    Cout, KH, KW = 8, 3, 3
    stride, padding, eps = 2, 1, 1e-5

    x = jax.random.normal(kx, (N, Cin, H, W), dtype=jnp.float32)
    # Conv weight init ~ N(0, sqrt(2 / (k*k*Cout))) as in _init_weights.
    w = jax.random.normal(kw, (Cout, Cin, KH, KW), dtype=jnp.float32) * float(
        np.sqrt(2.0 / (KH * KW * Cout)))
    # BatchNorm params as initialized by the module (inference-mode running stats).
    gamma = jnp.ones((Cout,), jnp.float32)
    beta = jnp.zeros((Cout,), jnp.float32)
    mean = jnp.zeros((Cout,), jnp.float32)
    var = jnp.ones((Cout,), jnp.float32)

    out = conv_swish(x, w, gamma, beta, mean, var,
                     stride=stride, padding=padding, eps=eps)
    out = jax.block_until_ready(out)

    # Pure-JAX reference: conv -> BN(affine) -> h_swish.
    conv = jax.lax.conv_general_dilated(
        x, w, window_strides=(stride, stride),
        padding=((padding, padding), (padding, padding)),
        dimension_numbers=("NCHW", "OIHW", "NCHW"))
    s = gamma / jnp.sqrt(var + eps)
    b = beta - mean * s
    y = conv * s[None, :, None, None] + b[None, :, None, None]
    ref = y * jnp.clip(y + 3.0, 0.0, 6.0) / 6.0

    assert out.shape == ref.shape, (out.shape, ref.shape)
    assert out.dtype == ref.dtype
    np.testing.assert_allclose(np.asarray(out), np.asarray(ref),
                               rtol=1e-2, atol=1e-2)

    print("KERNEL_OK")
</pallas_src>

<mosaic_0001>
module attributes {stable_mosaic.version = 11 : i64} {
  func.func @_conv_swish_kernel(%arg0: i32, %arg1: memref<8x36xf32, #tpu.memory_space<vmem>>, %arg2: memref<8x1xf32, #tpu.memory_space<vmem>>, %arg3: memref<36x128xf32, #tpu.memory_space<vmem>>, %arg4: memref<8x128xf32, #tpu.memory_space<vmem>>) attributes {dimension_semantics = [#tpu.dimension_semantics<parallel>], iteration_bounds = array<i64: 1>, scalar_prefetch = 0 : i64, scratch_operands = 0 : i64, tpu.core_type = #tpu.core_type<tc>, window_params = [{pipeline_mode = #tpu.pipeline_mode<synchronous>, transform_indices = @transform_0, window_bounds = array<i64: 8, 36>}, {pipeline_mode = #tpu.pipeline_mode<synchronous>, transform_indices = @transform_1, window_bounds = array<i64: 8, 1>}, {transform_indices = @transform_2, window_bounds = array<i64: 36, 128>}, {transform_indices = @transform_3, window_bounds = array<i64: 8, 128>}]} {
    %c0 = arith.constant 0 : index
    %c0_0 = arith.constant 0 : index
    %0 = vector.load %arg1[%c0, %c0_0] : memref<8x36xf32, #tpu.memory_space<vmem>>, vector<8x36xf32>
    %c0_1 = arith.constant 0 : index
    %c0_2 = arith.constant 0 : index
    %1 = vector.load %arg3[%c0_1, %c0_2] : memref<36x128xf32, #tpu.memory_space<vmem>>, vector<36x128xf32>
    %cst = arith.constant dense<0.000000e+00> : vector<8x128xf32>
    %2 = tpu.matmul %0, %1, %cst {dimension_numbers = #tpu.dot_dimension_numbers<[1], [0], [0], [1], [0, 0, 1, 1], [], []>} : vector<8x36xf32>, vector<36x128xf32>, vector<8x128xf32> -> vector<8x128xf32>
    %c0_3 = arith.constant 0 : index
    %c0_4 = arith.constant 0 : index
    %3 = vector.load %arg2[%c0_3, %c0_4] : memref<8x1xf32, #tpu.memory_space<vmem>>, vector<8x1xf32>
    %4 = vector.broadcast %3 : vector<8x1xf32> to vector<8x128xf32>
    %5 = arith.addf %2, %4 : vector<8x128xf32>
    %cst_5 = arith.constant 3.000000e+00 : f32
    %6 = vector.broadcast %cst_5 : f32 to vector<8x128xf32>
    %7 = arith.addf %5, %6 : vector<8x128xf32>
    %cst_6 = arith.constant 0.000000e+00 : f32
    %cst_7 = arith.constant 6.000000e+00 : f32
    %8 = vector.broadcast %cst_6 : f32 to vector<8x128xf32>
    %9 = arith.maximumf %8, %7 : vector<8x128xf32>
    %10 = vector.broadcast %cst_7 : f32 to vector<8x128xf32>
    %11 = arith.minimumf %10, %9 : vector<8x128xf32>
    %12 = arith.mulf %5, %11 : vector<8x128xf32>
    %cst_8 = arith.constant 0.166666672 : f32
    %13 = vector.broadcast %cst_8 : f32 to vector<8x128xf32>
    %14 = arith.mulf %12, %13 : vector<8x128xf32>
    %c0_9 = arith.constant 0 : index
    %c0_10 = arith.constant 0 : index
    %15 = vector.load %arg4[%c0_9, %c0_10] : memref<8x128xf32, #tpu.memory_space<vmem>>, vector<8x128xf32>
    tpu.vector_store %arg4[%c0_9, %c0_10], %14 {strides = array<i32>} : memref<8x128xf32, #tpu.memory_space<vmem>>, vector<8x128xf32>,
    return
  }
  func.func @transform_0(%arg0: i32) -> (i32, i32) {
    %c0_i32 = arith.constant 0 : i32
    %c0_i32_0 = arith.constant 0 : i32
    %c0_i32_1 = arith.constant 0 : i32
    return %c0_i32, %c0_i32_0 : i32, i32
  }
  func.func @transform_1(%arg0: i32) -> (i32, i32) {
    %c0_i32 = arith.constant 0 : i32
    %c0_i32_0 = arith.constant 0 : i32
    %c0_i32_1 = arith.constant 0 : i32
    return %c0_i32, %c0_i32_0 : i32, i32
  }
  func.func @transform_2(%arg0: i32) -> (i32, i32) {
    %c0_i32 = arith.constant 0 : i32
    %c0_i32_0 = arith.constant 0 : i32
    return %c0_i32, %arg0 : i32, i32
  }
  func.func @transform_3(%arg0: i32) -> (i32, i32) {
    %c0_i32 = arith.constant 0 : i32
    %c0_i32_0 = arith.constant 0 : i32
    return %c0_i32, %arg0 : i32, i32
  }
}

</mosaic_0001>

<bundles_post_ra>
// kernel: tpu_custom_call.1
= control target key start
LH: loop header
LB: loop body
LE: loop exit
PB: predicated region body
PF: predicated region fallthrough
CT: control target
= control target key end

     0   :  { %8 = vsyncpa [#allocation3], 0  ;;  %s282_s0 = inlined_call_operand.vmem [shape: f32[8,36], index: 0, kind: input, shape index: {}]   ;;  %s283_s1 = inlined_call_operand.vmem [shape: f32[8,1], index: 1, kind: input, shape index: {}]   ;;  %s284_s2 = inlined_call_operand.hbm [shape: f32[36,128], index: 2, kind: input, shape index: {}]   ;;  %s285_s3 = inlined_call_operand.hbm [shape: f32[8,128], index: 3, kind: output, shape index: {}]  }
   0x1   :  { %9 = vsyncpa [#allocation4], 0  ;;  %s224_s12 = smov [#allocation2]   ;;  %s176_s16 = scalar_lea.hbm %s284_s2, 640 }
   0x2   :  { %s19_s13 = sshll.u32 %s224_s12, 4  ;;  %p177_p0 = scmp.ne.s32.totalorder %s284_s2, %s176_s16  ;;  %s20_s13 = int_to_ptr.vmem [resolvable:$true] %s19_s13 }
   0x3   :  { %p180_p1 = scmp.lt.u32.totalorder %s176_s16, %s284_s2 }
   0x5   :  { %p182_p2 = pnand %p180_p1, %p177_p0 }
   0x7   :  { %185 = shalt.err (!%p182_p2)
}
   0x8   :  { %s186_s21 = scalar_lea.vmem %s20_s13, 640  ;;  %p191_p4 = scmp.lt.s32.totalorder %s20_s13, %s20_s13 }
   0x9   :  { %p187_p3 = scmp.ne.s32.totalorder %s20_s13, %s186_s21  ;;  %p192_p5 = scmp.lt.s32.totalorder %s186_s21, %s186_s21 }
   0xb   :  { %p193_p6 = por %p192_p5, %p191_p4 }
   0xd   :  { %p194_p7 = pnand %p193_p6, %p187_p3 }
   0xf   :  { %197 = shalt.err (!%p194_p7)
}
  0x10   :  { %s225_s22 = smov 128   ;;  %s226_s23 = smov 8  }
  0x11   :  { %25 = dma.hbm_to_vmem [thread:$0]  %s284_s2, 640, %s20_s13, [#allocation3], %s225_s22, %s225_s22, %s226_s23  }
  0x12   :  { %220 = dma.done.wait [#allocation3], 640  }
  0x13   :  { %221 = vsyncadd [#allocation3], 4294966656  ;;  %v227_v0 = vmov 0.0|0.0   ;;  %vm228_vm0 = vmmov 0   ;;  %v229_v1 = vmov 0.0   ;;  %v230_v2 = vmov 0  }
  0x14   :  { %161 = vmatprep.subr.bf16.mxu0 %v227_v0  ;;  %158 = vmatprep.mubr.msk.f32.mxu0 %vm228_vm0, %v229_v1  ;;  %v30_v3 = vld [vmem:[#allocation2] sm:$0xff]  ;;  %v31_v4 = vld [vmem:[#allocation2 + $0x8] sm:$0xff]  ;;  %v32_v5 = vld [vmem:[#allocation2 + $0x10] sm:$0xff]  ;;  %vm45_vm1 = vcmask 1043456   ;;  %vm41_vm2 = vcmask 293888  }
  0x15   :  { %175 = vset.pattern.permute.xlu0 %v230_v2  ;;  %v162_v6 = vpack.c.bf16 %v31_v4, %v30_v3  ;;  %v33_v7 = vld [vmem:[#allocation2 + $0x18] sm:$0xff]  ;;  %v35_v8 = vld [vmem:[%s283_s1] sm:$0xff]  ;;  %s231_s1 = smov [#allocation5]  }
  0x16   :  { %v165_v9 = vpack.c.bf16 %v33_v7, %v32_v5  ;;  %38 = vperm.xlu0 %175, %v35_v8   ;;  %v34_v10 = vld [vmem:[#allocation2 + $0x20] sm:$0xf]  ;;  %s131_s29 = sshll.u32 %s231_s1, 4  ;;  %s132_s29 = int_to_ptr.vmem [resolvable:$true] %s131_s29 }
  0x17   :  { %163 = vmatpush3.bf16.msra.mxu0 %v162_v6  ;;  %v29_v11 = vld [vmem:[%s282_s0] sm:$0xff]  ;;  %s198_s30 = scalar_lea.vmem %s132_s29, 128  ;;  %p203_p9 = scmp.lt.s32.totalorder %s132_s29, %s132_s29 }
  0x18   :  { %164 = vmatprep.subr.bf16.mxu0 %v227_v0  ;;  %p199_p8 = scmp.ne.s32.totalorder %s132_s29, %s198_s30  ;;  %p204_p10 = scmp.lt.s32.totalorder %s198_s30, %s198_s30 }
  0x1a   :  { %p205_p11 = por %p204_p10, %p203_p9 }
  0x1b   :  { %166 = vmatpush3.bf16.msra.mxu0 %v165_v9 }
  0x1c   :  { %156 = vmatprep.subr.mxu0 %v229_v1  ;;  %p206_p12 = pnand %p205_p11, %p199_p8 }
  0x1f   :  { %157 = vmatpush3.msk.msra.mxu0 %vm45_vm1, %v34_v10 }
  0x20   :  { %159 = vmatmul.mubr.msk.f32.vlgmr.msra.gmra.mrb[0].mxu0 %vm41_vm2, %v29_v11 }
  0x95   :  { %v39_v12 = vpop.permute.xlu0 %38 }
  0xf3   :  { %v115_v13 = vpop.f32.mrb[0].mxu0 }
  0xf4   :  { %v116_v14 = vadd.f32 %v115_v13, %v39_v12  ;;  %v160_v15 = vpop.f32.mrb[1].mxu0 }
  0xf6   :  { %v119_v16 = vadd.f32 3.0, %v116_v14 }
  0xf8   :  { %v120_v17 = vmax.f32 %v119_v16, 0.0 }
  0xfa   :  { %v121_v18 = vmin.f32 %v120_v17, 6.0 }
  0xfc   :  { %v122_v19 = vmul.f32 %v121_v18, %v116_v14 }
  0xfe   :  { %v123_v20 = vmul.f32 0.16666667, %v122_v19 }
 0x100   :  { %124 = vst [vmem:[#allocation5] sm:$0xff] %v123_v20 }
 0x101   :  { %209 = shalt.err (!%p206_p12)
}
 0x102   :  { %s210_s5 = scalar_lea.hbm %s285_s3, 128 }
 0x103   :  { %p211_p13 = scmp.ne.s32.totalorder %s285_s3, %s210_s5  ;;  %p214_p0 = scmp.lt.u32.totalorder %s210_s5, %s285_s3 }
 0x105   :  { %p216_p1 = pnand %p214_p0, %p211_p13 }
 0x107   :  { %219 = shalt.err (!%p216_p1)
}
 0x108   :  { %134 = dma.vmem_to_hbm [thread:$0]  %s132_s29, 128, %s285_s3, [#allocation4]  }
 0x109   :  { %222 = dma.done.wait [#allocation4], 128  }
 0x10a   :  { %223 = vsyncadd [#allocation4], 4294967168 }
 0x10b   :  { %138 = vsyncpa [#allocation3], 1 }
 0x10c   :  { %139 = vsyncpa [#allocation4], 1 }

</bundles_post_ra>
